<compile_context>
chip_gen: v7x
topology: tpu7x:2x2x1
jax: 0.10.0
libtpu: 0.0.40
codegen_flags: <defaults>
</compile_context>

<pallas_src>
import numpy as np
import jax
import jax.numpy as jnp
from jax.experimental import pallas as pl
from jax.experimental.pallas import tpu as pltpu

LANE = 128      # TPU lane width (last-dim quantum)
SUBLANE = 8     # f32 sublane quantum


# ---------------------------------------------------------------------------
# small helpers
# ---------------------------------------------------------------------------
def _round_up(x, m):
    return ((x + m - 1) // m) * m


def _pad2(x, r, c):
    return jnp.pad(x, ((0, r - x.shape[0]), (0, c - x.shape[1])))


def _pick_tile(total, target):
    """Largest multiple of LANE that divides `total` (a multiple of LANE) and is <= target."""
    t = min(target, total)
    t = max(LANE, (t // LANE) * LANE)
    while total % t:
        t -= LANE
    return t


def _vmem_cap_bytes():
    try:
        return int(pltpu.get_tpu_info().vmem_capacity_bytes)
    except Exception:
        return 64 << 20   # v7x per-TensorCore floor


def _mosaic_params(dimension_semantics, est_bytes):
    # est_bytes already includes the double-buffer factor; add headroom for the
    # compiler's internal scratch and clamp below the physical per-core capacity
    # (~51 MiB on v7x, ~102 MiB on v5e/v6e).
    cap = _vmem_cap_bytes()
    limit = int(min(max(est_bytes + (8 << 20), 32 << 20), int(cap * 0.8)))
    return pltpu.CompilerParams(dimension_semantics=dimension_semantics,
                                vmem_limit_bytes=limit)


# ---------------------------------------------------------------------------
# Pallas kernels
# ---------------------------------------------------------------------------
def _matmul_kernel(a_ref, b_ref, o_ref, acc_ref):
    @pl.when(pl.program_id(2) == 0)
    def _():
        acc_ref[...] = jnp.zeros_like(acc_ref)

    acc_ref[...] += jnp.dot(a_ref[...], b_ref[...],
                            preferred_element_type=jnp.float32)

    @pl.when(pl.program_id(2) == pl.num_programs(2) - 1)
    def _():
        o_ref[...] = acc_ref[...].astype(o_ref.dtype)


def matmul_tiled(a, b, tm=512, tk=2048, tn=256, cast_b=None):
    """Tiled MXU matmul: grid (M/tm, N/tn, K/tk), f32 VMEM accumulator.

    Operands that are already lane/sublane aligned (pre-padded) are passed through
    without an extra HBM copy.  `cast_b` casts the B operand (once, in XLA) so the
    streamed bytes are halved and the MXU runs the native bf16 path.
    """
    M, K = a.shape
    K2, N = b.shape
    assert K == K2
    if cast_b is not None and b.dtype != cast_b:
        b = b.astype(cast_b)
    Mp, Kp, Np = _round_up(M, LANE), _round_up(K, LANE), _round_up(N, LANE)
    tm = _pick_tile(Mp, tm)
    if Mp // tm < 2 and Mp > LANE:          # keep >=2 parallel M blocks (megacore)
        tm = _pick_tile(Mp, max(LANE, Mp // 2))
    tk = _pick_tile(Kp, tk)
    tn = _pick_tile(Np, tn)
    a_p = a if a.shape == (Mp, Kp) else jnp.pad(a, ((0, Mp - M), (0, Kp - K)))
    b_p = b if b.shape == (Kp, Np) else jnp.pad(b, ((0, Kp - K), (0, Np - N)))
    grid = (Mp // tm, Np // tn, Kp // tk)
    est = (2 * (tm * tk * a_p.dtype.itemsize + tk * tn * b_p.dtype.itemsize
                + tm * tn * 4) + tm * tn * 4)
    out = pl.pallas_call(
        _matmul_kernel,
        grid_spec=pltpu.PrefetchScalarGridSpec(
            num_scalar_prefetch=0,
            grid=grid,
            in_specs=[pl.BlockSpec((tm, tk), lambda i, j, k: (i, k)),
                      pl.BlockSpec((tk, tn), lambda i, j, k: (k, j))],
            out_specs=pl.BlockSpec((tm, tn), lambda i, j, k: (i, j)),
            scratch_shapes=[pltpu.VMEM((tm, tn), jnp.float32)],
        ),
        out_shape=jax.ShapeDtypeStruct((Mp, Np), jnp.float32),
        compiler_params=_mosaic_params(("parallel", "parallel", "arbitrary"), est),
    )(a_p, b_p)
    if Mp != M or Np != N:
        out = out[:M, :N]
    return out


def _mix_kernel(m_ref, x_ref, p_ref, o_ref):
    m = m_ref[...]
    o_ref[...] = (m * x_ref[...] + (1.0 - m) * p_ref[...]).astype(o_ref.dtype)


def masked_mix(mask, x, pooled, tr=1024):
    """mixed = mask*x + (1-mask)*pooled, stored bf16 (feeds the bf16 propagation matmul)."""
    R, Dc = x.shape          # R is already a multiple of LANE (padded node count)
    tr = _pick_tile(R, tr)
    est = 2 * (4 * (tr + 2 * tr * Dc) + 2 * tr * Dc)
    return pl.pallas_call(
        _mix_kernel,
        grid=(R // tr,),
        in_specs=[pl.BlockSpec((tr, 1), lambda i: (i, 0)),
                  pl.BlockSpec((tr, Dc), lambda i: (i, 0)),
                  pl.BlockSpec((tr, Dc), lambda i: (i, 0))],
        out_specs=pl.BlockSpec((tr, Dc), lambda i: (i, 0)),
        out_shape=jax.ShapeDtypeStruct((R, Dc), jnp.bfloat16),
        compiler_params=_mosaic_params(("parallel",), est),
    )(mask, x, pooled)


def _make_gate_kernel(n_hidden, inv_tmp):
    def kernel(*refs):
        h_refs = refs[:n_hidden]
        b1_ref, w2_ref, b2_ref, noise_ref, o_ref = refs[n_hidden:]
        h = h_refs[0][...]
        for r in h_refs[1:]:
            h = h + r[...]
        h = jnp.maximum(h + b1_ref[...], 0.0)                     # [tr, Hp] (VPU)
        # per-row dot with w2 done as w2 @ h^T on the MXU -> lane-dense [*, tr];
        # w2 is padded to 8 rows (row 0 carries the weights).
        m = jax.lax.dot_general(w2_ref[...], h,
                                dimension_numbers=(((1,), (1,)), ((), ())),
                                preferred_element_type=jnp.float32)[0:1, :]
        o_ref[...] = jax.nn.sigmoid((noise_ref[...] + m + b2_ref[...]) * inv_tmp)
    return kernel


def gate_from_hidden(hs, b1, w2_8, b2, noise, choosing_tmp, tr=512):
    """sigmoid((noise + (relu(sum_i hs[i] + b1) . w2 + b2)) / tmp) -> [R].

    hs: list of [R, Hp] pre-activation hidden terms.  Output and noise are
    lane-dense (1, tr) blocks; the wrapper slices back to [R].
    """
    assert len(hs) >= 1
    R, Hp = hs[0].shape
    Rp = _round_up(R, LANE)
    tr = _pick_tile(Rp, tr)
    if Rp // tr < 2 and Rp > LANE:
        tr = _pick_tile(Rp, max(LANE, Rp // 2))
    pad_r = Rp - R
    hs_p = [h if pad_r == 0 else jnp.pad(h, ((0, pad_r), (0, 0))) for h in hs]
    noise_p = jnp.pad(noise.reshape(1, R), ((0, 0), (0, pad_r)))
    n = len(hs)
    kern = _make_gate_kernel(n, 1.0 / choosing_tmp)
    in_specs = ([pl.BlockSpec((tr, Hp), lambda i: (i, 0)) for _ in range(n)]
                + [pl.BlockSpec((1, Hp), lambda i: (0, 0)),
                   pl.BlockSpec((8, Hp), lambda i: (0, 0)),
                   pl.BlockSpec((1, 1), lambda i: (0, 0)),
                   pl.BlockSpec((1, tr), lambda i: (0, i))])
    est = 4 * (2 * (n * tr * Hp + 9 * Hp + 1 + tr) + 2 * tr + 8 * tr)
    out = pl.pallas_call(
        kern,
        grid=(Rp // tr,),
        in_specs=in_specs,
        out_specs=pl.BlockSpec((1, tr), lambda i: (0, i)),
        out_shape=jax.ShapeDtypeStruct((1, Rp), jnp.float32),
        compiler_params=_mosaic_params(("parallel",), est),
    )(*hs_p, b1, w2_8, b2, noise_p)
    return out[0, :R]


# ---------------------------------------------------------------------------
# Plain-JAX glue (sparse SpMM, dedup, tiny losses)
# ---------------------------------------------------------------------------
def sparse_propagate(row, col, values, x, num_nodes):
    """Edge-dropped propagation as a segment-sum SpMM (matches torch_sparse.spmm)."""
    # TODO(synk): a Pallas SpMM (scalar-prefetched CSR offsets + per-row-tile
    # accumulation) would also cover pass 1 / the node-drop pass for large sparse
    # graphs; kept in XLA here.
    gathered = values[:, None] * jnp.take(x, col, axis=0)
    return jax.ops.segment_sum(gathered, row, num_segments=num_nodes,
                               indices_are_sorted=True)


def unique_padded(ids, size):
    """Fixed-size (static-shape) replacement for jnp.unique."""
    ids = ids.astype(jnp.int32)
    sorted_ids = jnp.sort(ids)
    is_first = jnp.concatenate(
        [jnp.ones((1,), dtype=bool), sorted_ids[1:] != sorted_ids[:-1]])
    pos = jnp.cumsum(is_first) - 1
    uniq = jnp.zeros((size,), jnp.int32).at[pos].set(sorted_ids)
    count = jnp.sum(is_first.astype(jnp.int32))
    mask = jnp.arange(size) < count
    return uniq, mask, count


def l2_normalize(x):
    nrm = jnp.sqrt(jnp.sum(x * x, axis=-1, keepdims=True))
    return x / jnp.maximum(nrm, 1e-12)


def gumbel_noise(key, shape, bias=1e-4):
    u = jax.random.uniform(key, shape, dtype=jnp.float32)
    eps = (bias - (1.0 - bias)) * u + (1.0 - bias)
    return jnp.log(eps) - jnp.log(1.0 - eps)


def bpr_loss(u, p, n):
    pos = jnp.sum(u * p, axis=-1)
    neg = jnp.sum(u * n, axis=-1)
    return -jnp.mean(jax.nn.log_sigmoid(pos - neg))


def ssl_compute(s1, s2, valid_mask, count, ssl_temp):
    inv_t = 1.0 / ssl_temp
    pos = jnp.sum(s1 * s2, axis=-1) * inv_t
    allsc = jnp.dot(s1, s2.T) * inv_t
    allsc = jnp.where(valid_mask[None, :], allsc, -jnp.inf)
    m = jnp.max(allsc, axis=-1)
    lse = m + jnp.log(jnp.sum(jnp.exp(allsc - m[:, None]), axis=-1))
    mi = pos - lse
    cnt = jnp.maximum(count, 1).astype(jnp.float32)
    return jnp.sum(jnp.where(valid_mask, mi, 0.0)) / cnt


# ---------------------------------------------------------------------------
# CGI forward
# ---------------------------------------------------------------------------
def cgi_forward(params, graph, hyper, user_id, pos_item, neg_item, noise_key):
    user_num = params["user_emb"].shape[0]
    item_num = params["item_emb"].shape[0]
    N = user_num + item_num
    D = params["user_emb"].shape[1]
    Dp = _round_up(D, LANE)
    Hp = _round_up(D, LANE)
    NP = _round_up(N, LANE)                       # padded node count (rows & cols)
    L = hyper["L"]
    row = graph["row"]
    col = graph["col"]
    vals = graph["vals"]
    n_interact = graph["n_interact"]
    E = row.shape[0]

    # one-time pre-pad + bf16 cast of the dense graph operators (dominant HBM stream)
    adj_pre = _pad2(graph["adj_norm"].astype(jnp.bfloat16), NP, NP)
    rw_pre = _pad2(graph["rw_adj"].astype(jnp.bfloat16), NP, NP)

    base_emb = jnp.concatenate([params["user_emb"], params["item_emb"]], axis=0)
    base_emb = _pad2(base_emb, NP, Dp)            # [NP, Dp] f32, zero pad rows/lanes

    # zero-padded MLP parameters (padding contributes exactly 0 -> same semantics)
    node_mlps, edge_mlps = [], []
    for i in range(L):
        nw1, nb1, nw2, nb2 = params["node_mlp"][i]
        node_mlps.append((_pad2(nw1, Dp, Hp), _pad2(nb1, 1, Hp),
                          _pad2(nw2.T, 8, Hp), nb2))
        ew1, eb1, ew2, eb2 = params["edge_mlp"][i]
        # W1 split into row-half / col-half: gather commutes with the linear map, so
        # the first layer runs per node (N rows) instead of per edge (E rows).
        edge_mlps.append((_pad2(ew1[:D], Dp, Hp), _pad2(ew1[D:], Dp, Hp),
                          _pad2(eb1, 1, Hp), _pad2(ew2.T, 8, Hp), eb2))

    keys = jax.random.split(noise_key, 2 * L)

    # --- pass 1: standard propagation + mask learners -----------------------
    cur = base_emb
    all_embeddings = [cur]
    edge_mask_list, node_mask_list = [], []
    for i in range(L):
        cur = matmul_tiled(adj_pre, cur, cast_b=jnp.bfloat16)     # [NP, Dp] f32
        all_embeddings.append(cur)

        # edge gate: first layer per node, then gather, then fused gate kernel
        ew1a, ew1b, eb1, ew2_8, eb2 = edge_mlps[i]
        h_r = matmul_tiled(cur, ew1a)                             # [NP, Hp]
        h_c = matmul_tiled(cur, ew1b)                             # [NP, Hp]
        # TODO(synk): fuse this row gather into the gate kernel via scalar-prefetched
        # row/col indices + DMA gather instead of materializing [E, Hp] in HBM.
        hr_g = jnp.take(h_r, row, axis=0)
        hc_g = jnp.take(h_c, col, axis=0)
        e_noise = gumbel_noise(keys[2 * i], (E,))
        edge_mask = gate_from_hidden([hr_g, hc_g], eb1, ew2_8, eb2, e_noise,
                                     hyper["choosing_tmp"])        # [E]
        edge_mask_list.append(edge_mask)

        # node gate
        nw1, nb1, nw2_8, nb2 = node_mlps[i]
        h_n = matmul_tiled(cur, nw1)                              # [NP, Hp]
        n_noise = gumbel_noise(keys[2 * i + 1], (NP,))
        node_mask = gate_from_hidden([h_n], nb1, nw2_8, nb2, n_noise,
                                     hyper["choosing_tmp"]).reshape(NP, 1)
        node_mask_list.append(node_mask)

    all_emb_mean = jnp.mean(jnp.stack(all_embeddings, axis=0), axis=0)
    user_embeddings = all_emb_mean[:user_num]
    item_embeddings = all_emb_mean[user_num:N]

    # --- pass 2: edge-dropped propagation (sparse SpMM, no dense scatter) ----
    cur_ed = base_emb[:N]
    all_ed = [cur_ed]
    edge_reg = 0.0
    for i in range(L):
        new_edge = vals * edge_mask_list[i]
        edge_reg = edge_reg + jnp.sum(new_edge) / n_interact
        cur_ed = sparse_propagate(row, col, new_edge, cur_ed, N)
        all_ed.append(cur_ed)
    ed_mean = jnp.mean(jnp.stack(all_ed, axis=0), axis=0)
    user_emb_ed = ed_mean[:user_num]
    item_emb_ed = ed_mean[user_num:]
    edge_reg = edge_reg / L

    # --- pass 3: node-dropped propagation (pooled matmul + mix + propagation) --
    cur_nd = base_emb
    all_nd = [cur_nd]
    node_reg = 0.0
    for i in range(L):
        pooled = matmul_tiled(rw_pre, cur_nd, cast_b=jnp.bfloat16)
        mixed = masked_mix(node_mask_list[i], cur_nd, pooled)     # bf16 [NP, Dp]
        cur_nd = matmul_tiled(adj_pre, mixed)
        all_nd.append(cur_nd)
        node_reg = node_reg + jnp.sum(node_mask_list[i][:N]) / N
    nd_mean = jnp.mean(jnp.stack(all_nd, axis=0), axis=0)
    user_emb_nd = nd_mean[:user_num]
    item_emb_nd = nd_mean[user_num:N]
    node_reg = node_reg / L

    # --- BPR losses (tiny: plain JAX; zero-padded lanes do not change dots) --
    rec_loss = bpr_loss(user_embeddings[user_id],
                        item_embeddings[pos_item],
                        item_embeddings[neg_item])
    rec_loss_edge = bpr_loss(user_emb_ed[user_id],
                             item_emb_ed[pos_item],
                             item_emb_ed[neg_item])
    rec_loss_node = bpr_loss(user_emb_nd[user_id],
                             item_emb_nd[pos_item],
                             item_emb_nd[neg_item])

    # --- SSL losses (static-shape padded dedup instead of jnp.unique) --------
    uu, u_mask, u_cnt = unique_padded(user_id, user_id.shape[0])
    ui, i_mask, i_cnt = unique_padded(pos_item, pos_item.shape[0])
    n_u = l2_normalize(user_embeddings[uu])
    n_i = l2_normalize(item_embeddings[ui])
    n_u_ed = l2_normalize(user_emb_ed[uu])
    n_u_nd = l2_normalize(user_emb_nd[uu])
    n_i_ed = l2_normalize(item_emb_ed[ui])
    n_i_nd = l2_normalize(item_emb_nd[ui])

    t = hyper["ssl_temp"]
    score_user_edge = ssl_compute(n_u_ed, n_u, u_mask, u_cnt, t)
    score_item_edge = ssl_compute(n_i_ed, n_i, i_mask, i_cnt, t)
    score_user_node = ssl_compute(n_u_nd, n_u, u_mask, u_cnt, t)
    score_item_node = ssl_compute(n_i_nd, n_i, i_mask, i_cnt, t)

    loss = (hyper["rec_loss_reg"] * (rec_loss_edge + rec_loss_node)
            + rec_loss
            + hyper["ssl_loss_reg"] * (score_user_edge + score_item_edge
                                       + score_user_node + score_item_node)
            + hyper["sparse_reg"] * (node_reg + edge_reg))
    return loss


# ---------------------------------------------------------------------------
# Deterministic synthetic graph / parameter construction
# ---------------------------------------------------------------------------
def build_graph(user_num, item_num, walk_length, seed=0):
    rng = np.random.RandomState(seed)
    N = user_num + item_num
    users, items = [], []
    for u in range(user_num):
        picks = rng.choice(item_num, size=3, replace=False)
        for it in picks:
            users.append(u)
            items.append(int(it))
    users = np.asarray(users)
    items = np.asarray(items)
    n_interact = len(users)

    A = np.zeros((N, N), np.float32)
    A[users, items + user_num] = 1.0
    A[items + user_num, users] = 1.0

    deg = A.sum(axis=1)
    d_inv_sqrt = np.where(deg > 0, deg ** -0.5, 0.0).astype(np.float32)
    adj_norm = d_inv_sqrt[:, None] * A * d_inv_sqrt[None, :]

    rows, cols = np.nonzero(adj_norm)          # row-major == torch coalesce order
    vals = adj_norm[rows, cols].astype(np.float32)

    adj_list = [list(np.nonzero(A[n])[0]) for n in range(N)]
    walk = np.zeros((N, walk_length + 1), dtype=np.int64)
    walk[:, 0] = np.arange(N)
    for s in range(1, walk_length + 1):
        for n in range(N):
            prev = walk[n, s - 1]
            nbrs = adj_list[prev]
            walk[n, s] = rng.choice(nbrs) if len(nbrs) > 0 else prev
    rw = np.zeros((N, N), np.float32)
    for n in range(N):
        rw[n, walk[n]] = 1.0
    rdeg = rw.sum(axis=1)
    rdeg_inv = np.where(rdeg > 0, 1.0 / rdeg, 0.0).astype(np.float32)
    rw_adj = rdeg_inv[:, None] * rw

    return {
        "adj_norm": jnp.asarray(adj_norm),
        "rw_adj": jnp.asarray(rw_adj),
        "row": jnp.asarray(rows, dtype=jnp.int32),
        "col": jnp.asarray(cols, dtype=jnp.int32),
        "vals": jnp.asarray(vals),
        "n_interact": float(n_interact),
    }


def build_params(user_num, item_num, emb, L, key):
    ks = jax.random.split(key, 2 + 8 * L)
    params = {
        "user_emb": jax.random.normal(ks[0], (user_num, emb), jnp.float32),
        "item_emb": jax.random.normal(ks[1], (item_num, emb), jnp.float32),
        "node_mlp": [],
        "edge_mlp": [],
    }
    idx = 2
    for _ in range(L):
        nw1 = jax.random.normal(ks[idx], (emb, emb), jnp.float32) / np.sqrt(emb)
        nb1 = jnp.zeros((1, emb), jnp.float32)
        nw2 = jax.random.normal(ks[idx + 1], (emb, 1), jnp.float32) / np.sqrt(emb)
        nb2 = jnp.zeros((1, 1), jnp.float32)
        params["node_mlp"].append((nw1, nb1, nw2, nb2))
        ew1 = jax.random.normal(ks[idx + 2], (2 * emb, emb), jnp.float32) / np.sqrt(2 * emb)
        eb1 = jnp.zeros((1, emb), jnp.float32)
        ew2 = jax.random.normal(ks[idx + 3], (emb, 1), jnp.float32) / np.sqrt(emb)
        eb2 = jnp.zeros((1, 1), jnp.float32)
        params["edge_mlp"].append((ew1, eb1, ew2, eb2))
        idx += 4
    return params


if __name__ == "__main__":
    USER_NUM, ITEM_NUM, EMB, L, WALK_LEN, BATCH = 16, 16, 32, 2, 3, 8

    hyper = {
        "L": L,
        "rec_loss_reg": 0.5,
        "ssl_loss_reg": 0.1,
        "ssl_temp": 0.2,
        "choosing_tmp": 0.5,
        "sparse_reg": 0.01,
    }

    graph = build_graph(USER_NUM, ITEM_NUM, WALK_LEN, seed=0)

    key = jax.random.PRNGKey(0)
    k_params, k_batch, k_noise = jax.random.split(key, 3)
    params = build_params(USER_NUM, ITEM_NUM, EMB, L, k_params)

    kb1, kb2, kb3 = jax.random.split(k_batch, 3)
    user_id = jax.random.randint(kb1, (BATCH,), 0, USER_NUM)
    pos_item = jax.random.randint(kb2, (BATCH,), 0, ITEM_NUM)
    neg_item = jax.random.randint(kb3, (BATCH,), 0, ITEM_NUM)

    loss = cgi_forward(params, graph, hyper, user_id, pos_item, neg_item, k_noise)
    loss = jax.block_until_ready(loss)

    assert bool(jnp.isfinite(loss)), "loss is not finite"
    print("KERNEL_OK")
</pallas_src>

<mosaic_0001>
module attributes {stable_mosaic.version = 11 : i64} {
  func.func @_matmul_kernel(%arg0: i32, %arg1: i32, %arg2: i32, %arg3: memref<128x128xbf16, #tpu.memory_space<vmem>>, %arg4: memref<128x128xbf16, #tpu.memory_space<vmem>>, %arg5: memref<128x128xf32, #tpu.memory_space<vmem>>, %arg6: memref<128x128xf32, #tpu.memory_space<vmem>>) attributes {dimension_semantics = [#tpu.dimension_semantics<parallel>, #tpu.dimension_semantics<parallel>, #tpu.dimension_semantics<arbitrary>], iteration_bounds = array<i64: 1, 1, 1>, scalar_prefetch = 0 : i64, scratch_operands = 1 : i64, tpu.core_type = #tpu.core_type<tc>, window_params = [{transform_indices = @transform_0, window_bounds = array<i64: 128, 128>}, {transform_indices = @transform_1, window_bounds = array<i64: 128, 128>}, {transform_indices = @transform_2, window_bounds = array<i64: 128, 128>}]} {
    %c0_i32 = arith.constant 0 : i32
    %0 = arith.cmpi eq, %arg2, %c0_i32 : i32
    %1 = arith.extui %0 : i1 to i32
    %c0_i32_0 = arith.constant 0 : i32
    %2 = arith.cmpi ne, %1, %c0_i32_0 : i32
    scf.if %2 {
      %cst_10 = arith.constant 0.000000e+00 : f32
      %12 = vector.broadcast %cst_10 : f32 to vector<128x128xf32>
      %c0_11 = arith.constant 0 : index
      %c0_12 = arith.constant 0 : index
      %13 = vector.load %arg6[%c0_11, %c0_12] : memref<128x128xf32, #tpu.memory_space<vmem>>, vector<128x128xf32>
      tpu.vector_store %arg6[%c0_11, %c0_12], %12 {strides = array<i32>} : memref<128x128xf32, #tpu.memory_space<vmem>>, vector<128x128xf32>,
    } else {
    }
    %c0 = arith.constant 0 : index
    %c0_1 = arith.constant 0 : index
    %3 = vector.load %arg6[%c0, %c0_1] : memref<128x128xf32, #tpu.memory_space<vmem>>, vector<128x128xf32>
    %c0_2 = arith.constant 0 : index
    %c0_3 = arith.constant 0 : index
    %4 = vector.load %arg3[%c0_2, %c0_3] : memref<128x128xbf16, #tpu.memory_space<vmem>>, vector<128x128xbf16>
    %c0_4 = arith.constant 0 : index
    %c0_5 = arith.constant 0 : index
    %5 = vector.load %arg4[%c0_4, %c0_5] : memref<128x128xbf16, #tpu.memory_space<vmem>>, vector<128x128xbf16>
    %cst = arith.constant dense<0.000000e+00> : vector<128x128xf32>
    %6 = tpu.matmul %4, %5, %cst {dimension_numbers = #tpu.dot_dimension_numbers<[1], [0], [0], [1], [0, 0, 1, 1], [], []>} : vector<128x128xbf16>, vector<128x128xbf16>, vector<128x128xf32> -> vector<128x128xf32>
    %7 = arith.addf %3, %6 : vector<128x128xf32>
    %c0_6 = arith.constant 0 : index
    %c0_7 = arith.constant 0 : index
    %8 = vector.load %arg6[%c0_6, %c0_7] : memref<128x128xf32, #tpu.memory_space<vmem>>, vector<128x128xf32>
    tpu.vector_store %arg6[%c0_6, %c0_7], %7 {strides = array<i32>} : memref<128x128xf32, #tpu.memory_space<vmem>>, vector<128x128xf32>,
    %c0_i32_8 = arith.constant 0 : i32
    %9 = arith.cmpi eq, %arg2, %c0_i32_8 : i32
    %10 = arith.extui %9 : i1 to i32
    %c0_i32_9 = arith.constant 0 : i32
    %11 = arith.cmpi ne, %10, %c0_i32_9 : i32
    scf.if %11 {
      %c0_10 = arith.constant 0 : index
      %c0_11 = arith.constant 0 : index
      %12 = vector.load %arg6[%c0_10, %c0_11] : memref<128x128xf32, #tpu.memory_space<vmem>>, vector<128x128xf32>
      %c0_12 = arith.constant 0 : index
      %c0_13 = arith.constant 0 : index
      %13 = vector.load %arg5[%c0_12, %c0_13] : memref<128x128xf32, #tpu.memory_space<vmem>>, vector<128x128xf32>
      tpu.vector_store %arg5[%c0_12, %c0_13], %12 {strides = array<i32>} : memref<128x128xf32, #tpu.memory_space<vmem>>, vector<128x128xf32>,
    } else {
    }
    return
  }
  func.func @transform_0(%arg0: i32, %arg1: i32, %arg2: i32) -> (i32, i32) {
    %c0_i32 = arith.constant 0 : i32
    return %arg0, %arg2 : i32, i32
  }
  func.func @transform_1(%arg0: i32, %arg1: i32, %arg2: i32) -> (i32, i32) {
    %c0_i32 = arith.constant 0 : i32
    return %arg2, %arg1 : i32, i32
  }
  func.func @transform_2(%arg0: i32, %arg1: i32, %arg2: i32) -> (i32, i32) {
    %c0_i32 = arith.constant 0 : i32
    return %arg0, %arg1 : i32, i32
  }
}

</mosaic_0001>

<bundles_post_ra>
// kernel: tpu_custom_call.1
= control target key start
LH: loop header
LB: loop body
LE: loop exit
PB: predicated region body
PF: predicated region fallthrough
CT: control target
= control target key end

     0   :  { %7 = vsyncpa [#allocation4], 0  ;;  %s620_s0 = inlined_call_operand.hbm [shape: bf16[128,128], index: 0, kind: input, shape index: {}]   ;;  %s621_s1 = inlined_call_operand.hbm [shape: bf16[128,128], index: 1, kind: input, shape index: {}]   ;;  %s622_s2 = inlined_call_operand.hbm [shape: f32[128,128], index: 2, kind: output, shape index: {}]  }
   0x1   :  { %8 = vsyncpa [#allocation7], 0 }
   0x2   :  { %9 = vsyncpa [#allocation5], 0  ;;  %s562_s9 = smov [#allocation3]   ;;  %s490_s13 = scalar_lea.hbm %s620_s0, 1024 }
   0x3   :  { %s15_s10 = sshll.u32 %s562_s9, 4  ;;  %p491_p0 = scmp.ne.s32.totalorder %s620_s0, %s490_s13  ;;  %s16_s10 = int_to_ptr.vmem [resolvable:$true] %s15_s10 }
   0x4   :  { %p494_p1 = scmp.lt.u32.totalorder %s490_s13, %s620_s0 }
   0x6   :  { %p496_p2 = pnand %p494_p1, %p491_p0 }
   0x8   :  { %499 = shalt.err (!%p496_p2)
}
   0x9   :  { %s500_s18 = scalar_lea.vmem %s16_s10, 1024  ;;  %p505_p4 = scmp.lt.s32.totalorder %s16_s10, %s16_s10 }
   0xa   :  { %p501_p3 = scmp.ne.s32.totalorder %s16_s10, %s500_s18  ;;  %p506_p5 = scmp.lt.s32.totalorder %s500_s18, %s500_s18 }
   0xc   :  { %p507_p6 = por %p506_p5, %p505_p4 }
   0xe   :  { %p508_p7 = pnand %p507_p6, %p501_p3 }
  0x10   :  { %511 = shalt.err (!%p508_p7)
}
  0x11   :  { %s563_s19 = smov 64   ;;  %s564_s20 = smov 4  }
  0x12   :  { %21 = dma.hbm_to_vmem [thread:$0]  %s620_s0, 1024, %s16_s10, [#allocation4], %s563_s19, %s563_s19, %s564_s20  }
  0x13   :  { %s565_s23 = smov [#allocation6]   ;;  %s512_s27 = scalar_lea.hbm %s621_s1, 1024 }
  0x14   :  { %s27_s24 = sshll.u32 %s565_s23, 4  ;;  %p513_p8 = scmp.ne.s32.totalorder %s621_s1, %s512_s27  ;;  %s28_s24 = int_to_ptr.vmem [resolvable:$true] %s27_s24 }
  0x15   :  { %p516_p9 = scmp.lt.u32.totalorder %s512_s27, %s621_s1 }
  0x17   :  { %p518_p10 = pnand %p516_p9, %p513_p8 }
  0x19   :  { %521 = shalt.err (!%p518_p10)
}
  0x1a   :  { %s522_s4 = scalar_lea.vmem %s28_s24, 1024  ;;  %p527_p12 = scmp.lt.s32.totalorder %s28_s24, %s28_s24 }
  0x1b   :  { %p523_p11 = scmp.ne.s32.totalorder %s28_s24, %s522_s4  ;;  %p528_p13 = scmp.lt.s32.totalorder %s522_s4, %s522_s4 }
  0x1d   :  { %p529_p0 = por %p528_p13, %p527_p12 }
  0x1f   :  { %p530_p1 = pnand %p529_p0, %p523_p11 }
  0x21   :  { %533 = shalt.err (!%p530_p1)
}
  0x22   :  { %33 = dma.hbm_to_vmem [thread:$0]  %s621_s1, 1024, %s28_s24, [#allocation7], %s563_s19, %s563_s19, %s564_s20  }
  0x23   :  { %556 = dma.done.wait [#allocation4], 1024  }
  0x24   :  { %557 = vsyncadd [#allocation4], 4294966272 }
  0x25   :  { %558 = dma.done.wait [#allocation7], 1024  }
  0x26   :  { %559 = vsyncadd [#allocation7], 4294966272  ;;  %v474_v0 = vld [vmem:[#allocation6] sm:$0xff]   ;;  %v475_v1 = vld [vmem:[#allocation6 + $0x8] sm:$0xff]   ;;  %s566_s1 = smov [#allocation8]  }
  0x27   :  { %419 = vmatprep.subr.bf16.mxu0 %v474_v0  ;;  %451 = vmatprep.subr.bf16.mxu1 %v474_v0  ;;  %v476_v2 = vld [vmem:[#allocation6 + $0x10] sm:$0xff]   ;;  %v477_v3 = vld [vmem:[#allocation6 + $0x18] sm:$0xff]   ;;  %v482_v4 = vld [vmem:[#allocation3] sm:$0xff]   ;;  %s374_s6 = sshll.u32 %s566_s1, 4  ;;  %s375_s6 = int_to_ptr.vmem [resolvable:$true] %s374_s6 }
  0x28   :  { %420 = vmatpush3.bf16.msra.mxu0 %v474_v0  ;;  %459 = vmatpush3.bf16.msra.mxu1 %v474_v0  ;;  %v483_v5 = vld [vmem:[#allocation3 + $0x20] sm:$0xff]   ;;  %v479_v7 = vld [vmem:[#allocation6 + $0x28] sm:$0xff]   ;;  %v480_v8 = vld [vmem:[#allocation6 + $0x30] sm:$0xff]   ;;  %s534_s7 = scalar_lea.vmem %s375_s6, 2048  ;;  %p539_p3 = scmp.lt.s32.totalorder %s375_s6, %s375_s6 }
  0x29   :  { %421 = vmatprep.subr.bf16.mxu0 %v475_v1  ;;  %452 = vmatprep.subr.bf16.mxu1 %v475_v1  ;;  %v478_v6 = vld [vmem:[#allocation6 + $0x20] sm:$0xff]   ;;  %v481_v9 = vld [vmem:[#allocation6 + $0x38] sm:$0xff]   ;;  %v484_v10 = vld [vmem:[#allocation3 + $0x8] sm:$0xff]   ;;  %p535_p2 = scmp.ne.s32.totalorder %s375_s6, %s534_s7  ;;  %p540_p4 = scmp.lt.s32.totalorder %s534_s7, %s534_s7 }
  0x2a   :  { %435 = vmatprep.mubr.bf16.mxu0 %v482_v4  ;;  %443 = vmatprep.mubr.bf16.mxu1 %v483_v5  ;;  %v485_v11 = vld [vmem:[#allocation3 + $0x28] sm:$0xff]   ;;  %v486_v12 = vld [vmem:[#allocation3 + $0x10] sm:$0xff]   ;;  %v488_v14 = vld [vmem:[#allocation3 + $0x18] sm:$0xff]  }
  0x2b   :  { %v487_v13 = vld [vmem:[#allocation3 + $0x30] sm:$0xff]   ;;  %v489_v15 = vld [vmem:[#allocation3 + $0x38] sm:$0xff]   ;;  %p541_p5 = por %p540_p4, %p539_p3 }
  0x2c   :  { %422 = vmatpush3.bf16.msra.mxu0 %v475_v1  ;;  %460 = vmatpush3.bf16.msra.mxu1 %v475_v1 }
  0x2d   :  { %423 = vmatprep.subr.bf16.mxu0 %v476_v2  ;;  %453 = vmatprep.subr.bf16.mxu1 %v476_v2  ;;  %p542_p6 = pnand %p541_p5, %p535_p2 }
  0x30   :  { %424 = vmatpush3.bf16.msra.mxu0 %v476_v2  ;;  %461 = vmatpush3.bf16.msra.mxu1 %v476_v2 }
  0x31   :  { %425 = vmatprep.subr.bf16.mxu0 %v477_v3  ;;  %454 = vmatprep.subr.bf16.mxu1 %v477_v3 }
  0x34   :  { %426 = vmatpush3.bf16.msra.mxu0 %v477_v3  ;;  %462 = vmatpush3.bf16.msra.mxu1 %v477_v3 }
  0x35   :  { %427 = vmatprep.subr.bf16.mxu0 %v478_v6  ;;  %455 = vmatprep.subr.bf16.mxu1 %v478_v6 }
  0x38   :  { %428 = vmatpush3.bf16.msra.mxu0 %v478_v6  ;;  %463 = vmatpush3.bf16.msra.mxu1 %v478_v6 }
  0x39   :  { %429 = vmatprep.subr.bf16.mxu0 %v479_v7  ;;  %456 = vmatprep.subr.bf16.mxu1 %v479_v7 }
  0x3c   :  { %430 = vmatpush3.bf16.msra.mxu0 %v479_v7  ;;  %464 = vmatpush3.bf16.msra.mxu1 %v479_v7 }
  0x3d   :  { %431 = vmatprep.subr.bf16.mxu0 %v480_v8  ;;  %457 = vmatprep.subr.bf16.mxu1 %v480_v8 }
  0x40   :  { %432 = vmatpush3.bf16.msra.mxu0 %v480_v8  ;;  %465 = vmatpush3.bf16.msra.mxu1 %v480_v8 }
  0x41   :  { %433 = vmatprep.subr.bf16.mxu0 %v481_v9  ;;  %458 = vmatprep.subr.bf16.mxu1 %v481_v9 }
  0x44   :  { %434 = vmatpush3.bf16.msra.mxu0 %v481_v9  ;;  %466 = vmatpush3.bf16.msra.mxu1 %v481_v9 }
  0x47   :  { %436 = vmatmul.mubr.bf16.vlgmr.msra.gmra.mrb[0].mxu0 %v484_v10  ;;  %444 = vmatmul.mubr.bf16.vlgmr.msra.gmra.mrb[0].mxu1 %v485_v11 }
  0x48   :  { %439 = vmatprep.mubr.bf16.mxu0 %v486_v12  ;;  %447 = vmatprep.mubr.bf16.mxu1 %v487_v13 }
  0x4f   :  { %440 = vmatmul.mubr.bf16.gmra.mrb[4].mxu0 %v488_v14  ;;  %448 = vmatmul.mubr.bf16.gmra.mrb[4].mxu1 %v489_v15 }
 0x11a   :  { %v437_v16 = vpop.f32.mrb[0].mxu0  ;;  %v445_v17 = vpop.f32.mrb[0].mxu1 }
 0x11b   :  { %355 = vst [vmem:[#allocation8 + $0x10] sm:$0xff] %v437_v16  ;;  %363 = vst [vmem:[#allocation8 + $0x50] sm:$0xff] %v445_v17  ;;  %v239_v18 = vpop.f32.mrb[1].mxu0  ;;  %v271_v19 = vpop.f32.mrb[1].mxu1 }
 0x11c   :  { %353 = vst [vmem:[#allocation8] sm:$0xff] %v239_v18  ;;  %361 = vst [vmem:[#allocation8 + $0x40] sm:$0xff] %v271_v19  ;;  %v438_v20 = vpop.f32.mrb[2].mxu0  ;;  %v446_v21 = vpop.f32.mrb[2].mxu1 }
 0x11d   :  { %356 = vst [vmem:[#allocation8 + $0x18] sm:$0xff] %v438_v20  ;;  %364 = vst [vmem:[#allocation8 + $0x58] sm:$0xff] %v446_v21  ;;  %v242_v22 = vpop.f32.mrb[3].mxu0  ;;  %v274_v23 = vpop.f32.mrb[3].mxu1 }
 0x11e   :  { %354 = vst [vmem:[#allocation8 + $0x8] sm:$0xff] %v242_v22  ;;  %362 = vst [vmem:[#allocation8 + $0x48] sm:$0xff] %v274_v23 }
 0x122   :  { %v441_v24 = vpop.f32.mrb[4].mxu0  ;;  %v449_v25 = vpop.f32.mrb[4].mxu1 }
 0x123   :  { %359 = vst [vmem:[#allocation8 + $0x30] sm:$0xff] %v441_v24  ;;  %367 = vst [vmem:[#allocation8 + $0x70] sm:$0xff] %v449_v25  ;;  %v255_v26 = vpop.f32.mrb[5].mxu0  ;;  %v287_v27 = vpop.f32.mrb[5].mxu1 }
 0x124   :  { %357 = vst [vmem:[#allocation8 + $0x20] sm:$0xff] %v255_v26  ;;  %365 = vst [vmem:[#allocation8 + $0x60] sm:$0xff] %v287_v27  ;;  %v442_v28 = vpop.f32.mrb[6].mxu0  ;;  %v450_v29 = vpop.f32.mrb[6].mxu1 }
 0x125   :  { %360 = vst [vmem:[#allocation8 + $0x38] sm:$0xff] %v442_v28  ;;  %368 = vst [vmem:[#allocation8 + $0x78] sm:$0xff] %v450_v29  ;;  %v258_v30 = vpop.f32.mrb[7].mxu0  ;;  %v290_v31 = vpop.f32.mrb[7].mxu1 }
 0x126   :  { %358 = vst [vmem:[#allocation8 + $0x28] sm:$0xff] %v258_v30  ;;  %366 = vst [vmem:[#allocation8 + $0x68] sm:$0xff] %v290_v31 }
 0x127   :  { %545 = shalt.err (!%p542_p6)
}
 0x128   :  { %s546_s10 = scalar_lea.hbm %s622_s2, 2048 }
 0x129   :  { %p547_p7 = scmp.ne.s32.totalorder %s622_s2, %s546_s10  ;;  %p550_p8 = scmp.lt.u32.totalorder %s546_s10, %s622_s2 }
 0x12b   :  { %p552_p9 = pnand %p550_p8, %p547_p7 }
 0x12d   :  { %555 = shalt.err (!%p552_p9)
}
 0x12e   :  { %s567_s15 = smov 128   ;;  %s568_s16 = smov 8  }
 0x12f   :  { %380 = dma.vmem_to_hbm [thread:$0]  %s375_s6, 2048, %s622_s2, [#allocation5], %s567_s15, %s567_s15, %s568_s16  }
 0x130   :  { %560 = dma.done.wait [#allocation5], 2048  }
 0x131   :  { %561 = vsyncadd [#allocation5], 4294965248 }
 0x132   :  { %384 = vsyncpa [#allocation4], 1 }
 0x133   :  { %385 = vsyncpa [#allocation7], 1 }
 0x134   :  { %386 = vsyncpa [#allocation5], 1 }

</bundles_post_ra>
